<compile_context>
chip_gen: v5e
topology: v5e:2x2
jax: 0.10.0
libtpu: 0.0.40
codegen_flags: <defaults>
</compile_context>

<pallas_src>
import math

import jax
import jax.numpy as jnp
from jax.experimental import pallas as pl
from jax.experimental.pallas import tpu as pltpu


def _copy_kernel(x_ref, o_ref):
    # Pure identity copy of the current (row_tile, WIDTH) block.
    o_ref[...] = x_ref[...]


def _plan_copy_layout(total, itemsize, target_block_bytes=2 << 20):
    """Pick a lane-dense 2D layout + row tiling for an identity copy.

    Returns (rows, width, row_tile) with:
      rows * width == total, width % 128 == 0, rows % 8 == 0,
      row_tile % 8 == 0, row_tile divides rows,
      row_tile * width * itemsize <= ~target_block_bytes.
    Returns None if `total` does not factor into such a slab.
    """
    width = None
    for w in (2048, 1024, 512, 256, 128):
        if total % w == 0 and (total // w) >= 8:
            width = w
            break
    if width is None:
        return None
    rows = total // width
    if rows % 8 != 0:
        return None

    # Largest row block (multiple of 8, dividing rows) under the byte target.
    max_rows = max(8, target_block_bytes // (width * itemsize))
    if rows >= 16:
        # Keep at least 2 grid steps so v7x's two TensorCores both get work.
        max_rows = min(max_rows, rows // 2)
    row_tile = 8
    start = max_rows - (max_rows % 8)
    for cand in range(start, 7, -8):
        if rows % cand == 0:
            row_tile = cand
            break
    return rows, width, row_tile


def reshape_pallas(x, outer_shape):
    """Equivalent of torch `x.view(x.size(0), *outer_shape)`."""
    b = x.shape[0]
    n = math.prod(x.shape[1:])
    if math.prod(outer_shape) != n:
        raise ValueError(
            f"cannot view {x.shape} as ({b}, {tuple(outer_shape)}): "
            "element count mismatch")
    out_shape = (b, *outer_shape)

    total = b * n
    itemsize = jnp.dtype(x.dtype).itemsize
    plan = _plan_copy_layout(total, itemsize)
    if plan is None:
        # Awkward element count: a view is metadata-only anyway, so skip the
        # materializing copy rather than run a masked / VMEM-unbounded path.
        return x.reshape(out_shape)

    rows, width, row_tile = plan
    x2d = x.reshape(rows, width)          # metadata-only (row-major)
    grid = (rows // row_tile,)
    bytes_accessed = 2 * total * itemsize  # HBM read + write

    y2d = pl.pallas_call(
        _copy_kernel,
        out_shape=jax.ShapeDtypeStruct((rows, width), x.dtype),
        grid_spec=pltpu.PrefetchScalarGridSpec(
            num_scalar_prefetch=0,
            grid=grid,
            in_specs=[pl.BlockSpec((row_tile, width), lambda i: (i, 0))],
            out_specs=pl.BlockSpec((row_tile, width), lambda i: (i, 0)),
        ),
        compiler_params=pltpu.CompilerParams(
            dimension_semantics=("parallel",),
            # ~2 MiB blocks * 4 live buffers (double-buffered in + out)
            # = ~8 MiB, comfortably inside this limit on v5e/v6e/v7x.
            vmem_limit_bytes=32 * 1024 * 1024,
        ),
        cost_estimate=pl.CostEstimate(
            flops=0, transcendentals=0, bytes_accessed=bytes_accessed),
    )(x2d)

    return y2d.reshape(out_shape)


if __name__ == "__main__":
    key = jax.random.PRNGKey(0)

    # Primary case: small NCHW input consistent with the module's usage.
    B, C, H, W = 2, 4, 16, 16
    x = jax.random.normal(key, (B, C, H, W), dtype=jnp.float32)
    outer_shape = (4, 256)                 # product == C*H*W

    y = reshape_pallas(x, outer_shape)
    y = jax.block_until_ready(y)
    y_ref = x.reshape(B, *outer_shape)
    assert y.shape == (B, *outer_shape), y.shape
    assert y.dtype == x.dtype
    assert bool(jnp.array_equal(y, y_ref))

    # Secondary case: exercises a multi-step "parallel" grid (lane-dense
    # (row_tile, 2048) blocks) while staying small.
    B2, C2, H2, W2 = 4, 16, 32, 32
    x2 = jax.random.normal(jax.random.PRNGKey(0), (B2, C2, H2, W2),
                           dtype=jnp.float32)
    outer2 = (C2 * H2, W2)
    y2 = jax.block_until_ready(reshape_pallas(x2, outer2))
    assert bool(jnp.array_equal(y2, x2.reshape(B2, *outer2)))

    print("KERNEL_OK")
</pallas_src>

<mosaic_0001>
module attributes {stable_mosaic.version = 11 : i64} {
  func.func @_copy_kernel(%arg0: i32, %arg1: memref<8x256xf32, #tpu.memory_space<vmem>>, %arg2: memref<8x256xf32, #tpu.memory_space<vmem>>) attributes {dimension_semantics = [#tpu.dimension_semantics<parallel>], iteration_bounds = array<i64: 1>, scalar_prefetch = 0 : i64, scratch_operands = 0 : i64, tpu.core_type = #tpu.core_type<tc>, window_params = [{transform_indices = @transform_0, window_bounds = array<i64: 8, 256>}, {transform_indices = @transform_1, window_bounds = array<i64: 8, 256>}]} {
    %c0 = arith.constant 0 : index
    %c0_0 = arith.constant 0 : index
    %0 = vector.load %arg1[%c0, %c0_0] : memref<8x256xf32, #tpu.memory_space<vmem>>, vector<8x256xf32>
    %c0_1 = arith.constant 0 : index
    %c0_2 = arith.constant 0 : index
    %1 = vector.load %arg2[%c0_1, %c0_2] : memref<8x256xf32, #tpu.memory_space<vmem>>, vector<8x256xf32>
    tpu.vector_store %arg2[%c0_1, %c0_2], %0 {strides = array<i32>} : memref<8x256xf32, #tpu.memory_space<vmem>>, vector<8x256xf32>,
    return
  }
  func.func @transform_0(%arg0: i32) -> (i32, i32) {
    %c0_i32 = arith.constant 0 : i32
    %c0_i32_0 = arith.constant 0 : i32
    return %arg0, %c0_i32 : i32, i32
  }
  func.func @transform_1(%arg0: i32) -> (i32, i32) {
    %c0_i32 = arith.constant 0 : i32
    %c0_i32_0 = arith.constant 0 : i32
    return %arg0, %c0_i32 : i32, i32
  }
}

</mosaic_0001>

<bundles_post_ra>
// kernel: tpu_custom_call.1
= control target key start
LH: loop header
LB: loop body
LE: loop exit
PB: predicated region body
PF: predicated region fallthrough
CT: control target
= control target key end

     0   :  { %6 = vsyncpa [#allocation3], 0  ;;  %s116_s0 = inlined_call_operand.hbm [shape: f32[8,256], index: 0, kind: input, shape index: {}]   ;;  %s117_s1 = inlined_call_operand.hbm [shape: f32[8,256], index: 1, kind: output, shape index: {}]  }
   0x1   :  { %7 = vsyncpa [#allocation4], 0  ;;  %s13_s8 = sshll.u32 %s116_s0, 4  ;;  %s98_s9 = smov [#allocation2]   ;;  %s14_s8 = int_to_ptr.hbm [resolvable:$true] %s13_s8 }
   0x2   :  { %s15_s10 = sshll.u32 %s98_s9, 4  ;;  %s16_s10 = int_to_ptr.vmem [resolvable:$true] %s15_s10 }
   0x3   :  { %18 = dma.hbm_to_vmem [thread:$0]  %s14_s8, 256, %s16_s10, [#allocation3]  }
   0x4   :  { %94 = dma.done.wait [#allocation3], 256  }
   0x5   :  { %95 = vsyncadd [#allocation3], 4294967040  ;;  %s99_s11 = smov [#allocation5]   ;;  %s34_s15 = sshll.u32 %s117_s1, 4  ;;  %v23_v0 = vld [vmem:[#allocation2] sm:$0xff]  ;;  %v24_v1 = vld [vmem:[#allocation2 + $0x8] sm:$0xff]  ;;  %s35_s15 = int_to_ptr.hbm [resolvable:$true] %s34_s15 }
   0x6   :  { %s32_s12 = sshll.u32 %s99_s11, 4  ;;  %25 = vst [vmem:[#allocation5] sm:$0xff] %v23_v0  ;;  %s33_s12 = int_to_ptr.vmem [resolvable:$true] %s32_s12 }
   0x7   :  { %26 = vst [vmem:[#allocation5 + $0x8] sm:$0xff] %v24_v1 }
   0x8   :  { %37 = dma.vmem_to_hbm [thread:$0]  %s33_s12, 256, %s35_s15, [#allocation4]  }
   0x9   :  { %96 = dma.done.wait [#allocation4], 256  }
   0xa   :  { %97 = vsyncadd [#allocation4], 4294967040 }
   0xb   :  { %42 = vsyncpa [#allocation3], 1 }
   0xc   :  { %43 = vsyncpa [#allocation4], 1 }

</bundles_post_ra>
